<compile_context>
chip_gen: v7x
topology: tpu7x:2x2x1
jax: 0.10.0
libtpu: 0.0.40
codegen_flags: <defaults>
</compile_context>

<pallas_src>
import functools

import jax
import jax.numpy as jnp
from jax.experimental import pallas as pl
from jax.experimental.pallas import tpu as pltpu


# --------------------------------------------------------------------------
# Kernel
# --------------------------------------------------------------------------
def _highway_kernel(x_ref, w_ref, b_ref, o_ref, acc_ref, *, resident_weights):
    """One grid step = one (batch_tile, layer) pair.

    x_ref   : [TB, S]        input activations (consumed at layer == 0 only)
    w_ref   : [L, S, 3S]     (resident)  or  [S, 3S] (streamed), low precision
    b_ref   : [L, 1, 3S]     packed biases, f32, VMEM-resident
    o_ref   : [TB, S]        output (written at the last layer only)
    acc_ref : [TB, S] f32    persistent VMEM scratch carrying x across layers
    """
    layer = pl.program_id(1)
    num_layers = pl.num_programs(1)
    S = o_ref.shape[-1]

    @pl.when(layer == 0)
    def _():
        acc_ref[...] = x_ref[...].astype(jnp.float32)

    # Matmul inputs in the weight dtype (bf16) -> native MXU; f32 accumulation.
    x_mm = acc_ref[...].astype(w_ref.dtype)
    w = w_ref[layer] if resident_weights else w_ref[...]   # [S, 3S]
    b = b_ref[layer]                                        # [1, 3S] f32

    # Single fused matmul: [TB, S] @ [S, 3S] -> [TB, 3S]
    z = jnp.dot(x_mm, w, preferred_element_type=jnp.float32) + b

    gate = jax.nn.sigmoid(z[:, :S])
    nonlinear = jax.nn.relu(z[:, S:2 * S])
    linear = z[:, 2 * S:]

    # x = gate*nonlinear + (1-gate)*linear, with one fewer multiply (exact).
    acc_ref[...] = linear + gate * (nonlinear - linear)

    @pl.when(layer == num_layers - 1)
    def _():
        o_ref[...] = acc_ref[...].astype(o_ref.dtype)


# --------------------------------------------------------------------------
# Wrapper helpers
# --------------------------------------------------------------------------
def _vmem_budget_bytes():
    """Usable VMEM budget, capped at the physical capacity of this chip."""
    try:
        phys = int(pltpu.get_tpu_info().vmem_capacity_bytes)
    except Exception:
        phys = 64 * 1024 * 1024   # conservative (v7x per-TensorCore)
    return int(phys * 0.9)


def _choose_batch_tile(B, S, L, w_itemsize, budget):
    """Largest sublane-aligned tile dividing B with nb>=2 (megacore), VMEM-fit."""
    tile = None
    for t in (1024, 512, 256, 128, 64, 32, 16, 8):
        if B % t == 0 and B // t >= 2:
            tile = t
            break
    if tile is None:
        tile = B   # full-batch block (valid via the full-array-dim exemption)

    # Minimum weight footprint = streamed (double-buffered one layer) + biases.
    min_weight = 2 * (S * 3 * S * w_itemsize) + 2 * (L * 3 * S * 4)

    def io_bytes(t):
        # double-buffered x and out blocks (f32) + persistent f32 scratch
        return 2 * 2 * t * S * 4 + t * S * 4

    while tile > 8 and tile % 2 == 0 and io_bytes(tile) + min_weight > budget:
        tile //= 2
    return tile


# --------------------------------------------------------------------------
# Wrapper
# --------------------------------------------------------------------------
def highway_forward(x, w_packed, b_packed, *, batch_tile=None):
    """x: [B, S].  w_packed: [L, S, 3S] (bf16 recommended).  b_packed: [L, 1, 3S] f32."""
    B, S = x.shape
    L, S_w, threeS = w_packed.shape
    assert S_w == S and threeS == 3 * S
    assert b_packed.shape == (L, 1, 3 * S)

    w_itemsize = jnp.dtype(w_packed.dtype).itemsize
    budget = _vmem_budget_bytes()

    if batch_tile is None:
        batch_tile = _choose_batch_tile(B, S, L, w_itemsize, budget)
    assert B % batch_tile == 0
    nb = B // batch_tile
    grid = (nb, L)

    # VMEM accounting (conservative: count 2x buffers even for constant blocks).
    w_total = L * S * 3 * S * w_itemsize
    b_total = L * 3 * S * 4
    io_bytes = 2 * 2 * batch_tile * S * 4 + batch_tile * S * 4
    resident_need = 2 * (w_total + b_total) + io_bytes
    stream_need = 2 * (S * 3 * S * w_itemsize) + 2 * b_total + io_bytes

    resident_weights = resident_need <= budget
    needed = resident_need if resident_weights else stream_need
    vmem_limit = int(min(budget, max(16 * 1024 * 1024, needed + (2 << 20))))

    # Weights are read from HBM once per call if resident, once per batch tile
    # if streamed.
    weight_hbm_reads = 1 if resident_weights else nb
    cost = pl.CostEstimate(
        flops=int(2 * 3 * L * B * S * S),
        transcendentals=int(L * B * S),                     # sigmoid
        bytes_accessed=int(weight_hbm_reads * w_total + b_total + 2 * B * S * 4),
    )

    if resident_weights:
        # Full-array block, constant index -> fetched once, indexed in-kernel.
        w_spec = pl.BlockSpec((L, S, 3 * S), lambda b, l: (0, 0, 0))
    else:
        # Stream one layer per grid step (auto double-buffered behind compute).
        w_spec = pl.BlockSpec((None, S, 3 * S), lambda b, l: (l, 0, 0))

    grid_spec = pltpu.PrefetchScalarGridSpec(
        num_scalar_prefetch=0,
        grid=grid,
        in_specs=[
            # activations: one block per batch tile, constant across layers
            pl.BlockSpec((batch_tile, S), lambda b, l: (b, 0)),
            w_spec,
            # packed biases: single resident block for all layers
            pl.BlockSpec((L, 1, 3 * S), lambda b, l: (0, 0, 0)),
        ],
        out_specs=pl.BlockSpec((batch_tile, S), lambda b, l: (b, 0)),
        scratch_shapes=[pltpu.VMEM((batch_tile, S), jnp.float32)],
    )

    kernel = functools.partial(_highway_kernel, resident_weights=resident_weights)

    return pl.pallas_call(
        kernel,
        out_shape=jax.ShapeDtypeStruct((B, S), x.dtype),
        grid_spec=grid_spec,
        compiler_params=pltpu.CompilerParams(
            dimension_semantics=("parallel", "arbitrary"),
            vmem_limit_bytes=vmem_limit,
        ),
        cost_estimate=cost,
    )(x, w_packed, b_packed)


# --------------------------------------------------------------------------
# Parameter init / packing / references
# --------------------------------------------------------------------------
def init_highway_params(key, size, num_layers):
    """Deterministic nn.Linear-style init: U(-1/sqrt(size), 1/sqrt(size))."""
    bound = 1.0 / (size ** 0.5)
    ks = jax.random.split(key, 6)
    shape_w = (num_layers, size, size)      # [L, out, in] like nn.Linear
    shape_b = (num_layers, size)
    return {
        "w_nonlinear": jax.random.uniform(ks[0], shape_w, jnp.float32, -bound, bound),
        "b_nonlinear": jax.random.uniform(ks[1], shape_b, jnp.float32, -bound, bound),
        "w_linear":    jax.random.uniform(ks[2], shape_w, jnp.float32, -bound, bound),
        "b_linear":    jax.random.uniform(ks[3], shape_b, jnp.float32, -bound, bound),
        "w_gate":      jax.random.uniform(ks[4], shape_w, jnp.float32, -bound, bound),
        "b_gate":      jax.random.uniform(ks[5], shape_b, jnp.float32, -bound, bound),
    }


def pack_highway_params(params, weight_dtype=jnp.bfloat16):
    """One-time packing: transpose + concat along the output dim, cast weights.

    Returns (w_packed [L, S, 3S] in weight_dtype, b_packed [L, 1, 3S] f32) with
    column order [gate | nonlinear | linear] so the kernel computes x @ W + b.
    Biases stay f32 (added after the f32 matmul result).
    """
    L, S, _ = params["w_nonlinear"].shape
    wg_t = jnp.transpose(params["w_gate"], (0, 2, 1))        # [L, S(in), S(out)]
    wn_t = jnp.transpose(params["w_nonlinear"], (0, 2, 1))
    wl_t = jnp.transpose(params["w_linear"], (0, 2, 1))
    w_packed = jnp.concatenate([wg_t, wn_t, wl_t], axis=-1).astype(weight_dtype)
    b_packed = jnp.concatenate(
        [params["b_gate"], params["b_nonlinear"], params["b_linear"]],
        axis=-1).reshape(L, 1, 3 * S).astype(jnp.float32)    # [L, 1, 3S]
    return w_packed, b_packed


def highway_reference(x, params):
    """Pure-JAX f32 reference mirroring the PyTorch forward (f = ReLU)."""
    num_layers = params["w_nonlinear"].shape[0]
    for l in range(num_layers):
        gate = jax.nn.sigmoid(x @ params["w_gate"][l].T + params["b_gate"][l])
        nonlinear = jax.nn.relu(x @ params["w_nonlinear"][l].T + params["b_nonlinear"][l])
        linear = x @ params["w_linear"][l].T + params["b_linear"][l]
        x = gate * nonlinear + (1 - gate) * linear
    return x


def highway_reference_packed(x, w_packed, b_packed):
    """Reference mirroring the kernel's numerics (low-precision matmul inputs,
    f32 accumulation and gating)."""
    L, S, _ = w_packed.shape
    h = x.astype(jnp.float32)
    for l in range(L):
        z = jnp.dot(h.astype(w_packed.dtype).astype(jnp.float32),
                    w_packed[l].astype(jnp.float32)) + b_packed[l]
        gate = jax.nn.sigmoid(z[:, :S])
        nonlinear = jax.nn.relu(z[:, S:2 * S])
        linear = z[:, 2 * S:]
        h = linear + gate * (nonlinear - linear)
    return h


# --------------------------------------------------------------------------
# Test
# --------------------------------------------------------------------------
if __name__ == "__main__":
    batch = 2
    size = 32
    num_layers = 2

    key = jax.random.PRNGKey(0)
    kx, kp = jax.random.split(key)
    x = jax.random.normal(kx, (batch, size), dtype=jnp.float32)
    params = init_highway_params(kp, size, num_layers)

    # One-time packing / bf16 cast (outside the per-call hot path).
    w_packed, b_packed = pack_highway_params(params)
    w_packed = jax.block_until_ready(w_packed)
    b_packed = jax.block_until_ready(b_packed)

    out = highway_forward(x, w_packed, b_packed)
    out = jax.block_until_ready(out)
    assert out.shape == (batch, size)

    # Tight check against a reference that mirrors the kernel's bf16 numerics.
    ref_packed = highway_reference_packed(x, w_packed, b_packed)
    assert jnp.allclose(out, ref_packed, atol=1e-4, rtol=1e-4), \
        "mismatch vs packed (bf16-mirroring) reference"

    # Loose check against the pure-f32 PyTorch-equivalent reference
    # (bf16 weight quantization loosens this tolerance by design).
    ref_f32 = highway_reference(x, params)
    assert jnp.allclose(out, ref_f32, atol=5e-2, rtol=5e-2), \
        "mismatch vs f32 reference"

    print("KERNEL_OK")
</pallas_src>

<mosaic_0001>
module attributes {stable_mosaic.version = 11 : i64} {
  func.func @_highway_kernel(%arg0: i32, %arg1: i32, %arg2: memref<2x32xf32, #tpu.memory_space<vmem>>, %arg3: memref<2x32x96xbf16, #tpu.memory_space<vmem>>, %arg4: memref<2x1x96xf32, #tpu.memory_space<vmem>>, %arg5: memref<2x32xf32, #tpu.memory_space<vmem>>, %arg6: memref<2x32xf32, #tpu.memory_space<vmem>>) attributes {dimension_semantics = [#tpu.dimension_semantics<parallel>, #tpu.dimension_semantics<arbitrary>], iteration_bounds = array<i64: 1, 2>, scalar_prefetch = 0 : i64, scratch_operands = 1 : i64, tpu.core_type = #tpu.core_type<tc>, window_params = [{transform_indices = @transform_0, window_bounds = array<i64: 2, 32>}, {pipeline_mode = #tpu.pipeline_mode<synchronous>, transform_indices = @transform_1, window_bounds = array<i64: 2, 32, 96>}, {pipeline_mode = #tpu.pipeline_mode<synchronous>, transform_indices = @transform_2, window_bounds = array<i64: 2, 1, 96>}, {transform_indices = @transform_3, window_bounds = array<i64: 2, 32>}]} {
    %c0_i32 = arith.constant 0 : i32
    %0 = arith.cmpi eq, %arg1, %c0_i32 : i32
    %1 = arith.extui %0 : i1 to i32
    %c0_i32_0 = arith.constant 0 : i32
    %2 = arith.cmpi ne, %1, %c0_i32_0 : i32
    scf.if %2 {
      %c0_11 = arith.constant 0 : index
      %c0_12 = arith.constant 0 : index
      %31 = vector.load %arg2[%c0_11, %c0_12] : memref<2x32xf32, #tpu.memory_space<vmem>>, vector<2x32xf32>
      %c0_13 = arith.constant 0 : index
      %c0_14 = arith.constant 0 : index
      %32 = vector.load %arg6[%c0_13, %c0_14] : memref<2x32xf32, #tpu.memory_space<vmem>>, vector<2x32xf32>
      tpu.vector_store %arg6[%c0_13, %c0_14], %31 {strides = array<i32>} : memref<2x32xf32, #tpu.memory_space<vmem>>, vector<2x32xf32>,
    } else {
    }
    %c0 = arith.constant 0 : index
    %c0_1 = arith.constant 0 : index
    %3 = vector.load %arg6[%c0, %c0_1] : memref<2x32xf32, #tpu.memory_space<vmem>>, vector<2x32xf32>
    %4 = arith.truncf %3 : vector<2x32xf32> to vector<2x32xbf16>
    %5 = arith.index_cast %arg1 : i32 to index
    %c0_2 = arith.constant 0 : index
    %c0_3 = arith.constant 0 : index
    %6 = vector.load %arg3[%5, %c0_2, %c0_3] : memref<2x32x96xbf16, #tpu.memory_space<vmem>>, vector<1x32x96xbf16>
    %7 = vector.shape_cast %6 : vector<1x32x96xbf16> to vector<32x96xbf16>
    %8 = arith.index_cast %arg1 : i32 to index
    %c0_4 = arith.constant 0 : index
    %c0_5 = arith.constant 0 : index
    %9 = vector.load %arg4[%8, %c0_4, %c0_5] : memref<2x1x96xf32, #tpu.memory_space<vmem>>, vector<1x1x96xf32>
    %10 = vector.shape_cast %9 : vector<1x1x96xf32> to vector<1x96xf32>
    %cst = arith.constant dense<0.000000e+00> : vector<2x96xf32>
    %11 = tpu.matmul %4, %7, %cst {dimension_numbers = #tpu.dot_dimension_numbers<[1], [0], [0], [1], [0, 0, 1, 1], [], []>} : vector<2x32xbf16>, vector<32x96xbf16>, vector<2x96xf32> -> vector<2x96xf32>
    %12 = vector.broadcast %10 : vector<1x96xf32> to vector<2x96xf32>
    %13 = arith.addf %11, %12 : vector<2x96xf32>
    %14 = vector.extract_strided_slice %13 {offsets = [0, 0], sizes = [2, 32], strides = [1, 1]} : vector<2x96xf32> to vector<2x32xf32>
    %15 = arith.negf %14 : vector<2x32xf32>
    %16 = math.exp %15 : vector<2x32xf32>
    %cst_6 = arith.constant 1.000000e+00 : f32
    %17 = vector.broadcast %cst_6 : f32 to vector<2x32xf32>
    %18 = arith.addf %17, %16 : vector<2x32xf32>
    %19 = arith.divf %17, %18 : vector<2x32xf32>
    %20 = vector.extract_strided_slice %13 {offsets = [0, 32], sizes = [2, 32], strides = [1, 1]} : vector<2x96xf32> to vector<2x32xf32>
    %cst_7 = arith.constant 0.000000e+00 : f32
    %21 = vector.broadcast %cst_7 : f32 to vector<2x32xf32>
    %22 = arith.maximumf %20, %21 : vector<2x32xf32>
    %23 = vector.extract_strided_slice %13 {offsets = [0, 64], sizes = [2, 32], strides = [1, 1]} : vector<2x96xf32> to vector<2x32xf32>
    %24 = arith.subf %22, %23 : vector<2x32xf32>
    %25 = arith.mulf %19, %24 : vector<2x32xf32>
    %26 = arith.addf %23, %25 : vector<2x32xf32>
    %c0_8 = arith.constant 0 : index
    %c0_9 = arith.constant 0 : index
    %27 = vector.load %arg6[%c0_8, %c0_9] : memref<2x32xf32, #tpu.memory_space<vmem>>, vector<2x32xf32>
    tpu.vector_store %arg6[%c0_8, %c0_9], %26 {strides = array<i32>} : memref<2x32xf32, #tpu.memory_space<vmem>>, vector<2x32xf32>,
    %c1_i32 = arith.constant 1 : i32
    %28 = arith.cmpi eq, %arg1, %c1_i32 : i32
    %29 = arith.extui %28 : i1 to i32
    %c0_i32_10 = arith.constant 0 : i32
    %30 = arith.cmpi ne, %29, %c0_i32_10 : i32
    scf.if %30 {
      %c0_11 = arith.constant 0 : index
      %c0_12 = arith.constant 0 : index
      %31 = vector.load %arg6[%c0_11, %c0_12] : memref<2x32xf32, #tpu.memory_space<vmem>>, vector<2x32xf32>
      %c0_13 = arith.constant 0 : index
      %c0_14 = arith.constant 0 : index
      %32 = vector.load %arg5[%c0_13, %c0_14] : memref<2x32xf32, #tpu.memory_space<vmem>>, vector<2x32xf32>
      tpu.vector_store %arg5[%c0_13, %c0_14], %31 {strides = array<i32>} : memref<2x32xf32, #tpu.memory_space<vmem>>, vector<2x32xf32>,
    } else {
    }
    return
  }
  func.func @transform_0(%arg0: i32, %arg1: i32) -> (i32, i32) {
    %c0_i32 = arith.constant 0 : i32
    %c0_i32_0 = arith.constant 0 : i32
    return %arg0, %c0_i32 : i32, i32
  }
  func.func @transform_1(%arg0: i32, %arg1: i32) -> (i32, i32, i32) {
    %c0_i32 = arith.constant 0 : i32
    %c0_i32_0 = arith.constant 0 : i32
    %c0_i32_1 = arith.constant 0 : i32
    %c0_i32_2 = arith.constant 0 : i32
    return %c0_i32, %c0_i32_0, %c0_i32_1 : i32, i32, i32
  }
  func.func @transform_2(%arg0: i32, %arg1: i32) -> (i32, i32, i32) {
    %c0_i32 = arith.constant 0 : i32
    %c0_i32_0 = arith.constant 0 : i32
    %c0_i32_1 = arith.constant 0 : i32
    %c0_i32_2 = arith.constant 0 : i32
    return %c0_i32, %c0_i32_0, %c0_i32_1 : i32, i32, i32
  }
  func.func @transform_3(%arg0: i32, %arg1: i32) -> (i32, i32) {
    %c0_i32 = arith.constant 0 : i32
    %c0_i32_0 = arith.constant 0 : i32
    return %arg0, %c0_i32 : i32, i32
  }
}

</mosaic_0001>

<bundles_post_ra>
// kernel: tpu_custom_call.1
= control target key start
LH: loop header
LB: loop body
LE: loop exit
PB: predicated region body
PF: predicated region fallthrough
CT: control target
= control target key end

     0   :  { %8 = vsyncpa [#allocation4], 0  ;;  %s763_s0 = inlined_call_operand.hbm [shape: f32[2,32], index: 0, kind: input, shape index: {}]   ;;  %s764_s1 = inlined_call_operand.hbm [shape: bf16[2,32,96], index: 1, kind: input, shape index: {}]   ;;  %s765_s2 = inlined_call_operand.vmem [shape: f32[2,1,96], index: 2, kind: input, shape index: {}]   ;;  %s766_s3 = inlined_call_operand.hbm [shape: f32[2,32], index: 3, kind: output, shape index: {}]  }
   0x1   :  { %9 = vsyncpa [#allocation7], 0 }
   0x2   :  { %10 = vsyncpa [#allocation5], 0  ;;  %s621_s12 = smov 0   ;;  %s623_s13 = smov 0  }
   0x3   :  { %s625_s14 = smov 0  }
   0x4 LB: > { %s378_s15 = sadd.s32 4294967295, %s590_s14   ;;  %s25_s16 = sadd.s32 1, %s586_s13  ;;  %s590_s14 = sphi %s625_s14, %s16_s14   ;;  %s586_s13 = sphi %s623_s13, %s777_s13   ;;  %s582_s12 = sphi %s621_s12, %s776_s12  }
   0x5   : > { %p26_p0 = scmp.ge.s32.totalorder %s25_s16, 2  ;;  %p379_p1 = scmp.ge.s32.totalorder %s590_s14, 1 }
   0x6   : > { %p127_p2 = scmp.lt.s32.totalorder %s590_s14, 3  ;;  %p648_p4 = scmp.eq.s32.totalorder %s378_s15, 0 }
   0x7   : > { %s779_s16 = smov (%p26_p0, %s25_s16), 0  ;;  %s592_s19 = smov [#allocation3]  }
   0x8   : > { %p642_p3 = pnand %p379_p1, %p127_p2  ;;  %s142_s20 = sshll.u32 %s592_s19, 4  ;;  %s143_s20 = int_to_ptr.vmem [resolvable:$true] %s142_s20 }
   0x9   : > { %s771_s18 = scalar_select %p648_p4, 1, 0 }
   0xa   : > { %s770_s17 = scalar_select %p642_p3, 1, 0 }
   0xb   : > { %p422_p5 = pneg %p642_p3  ;;  %s593_s21 = smov [#allocation6]  }
   0xc   : > { %s152_s22 = sshll.u32 %s593_s21, 4  ;;  %s474_s26 = scalar_lea.hbm %s763_s0, 32  ;;  %s660_s22 = int_to_ptr.vmem [resolvable:$true] %s152_s22 }
   0xd   : > { %p656_p6 = pnand %p648_p4, %p422_p5  ;;  %p475_p7 = scmp.ne.s32.totalorder %s763_s0, %s474_s26 }
   0xe   : > { %p481_p11 = scmp.lt.u32.totalorder %s474_s26, %s763_s0 }
   0xf   : > { %p476_p8 = pneg %p656_p6 }
  0x11   : > { %p477_p9 = pnand %p476_p8, %p475_p7 }
  0x13   : > { %p478_p10 = pneg %p477_p9 }
  0x15   : > { %p483_p12 = pnand %p481_p11, %p478_p10 }
  0x17   : > { %486 = shalt.err (!%p483_p12)
}
  0x18   : > { %s487_s4 = scalar_lea.vmem %s143_s20, 32  ;;  %p495_p2 = scmp.lt.s32.totalorder %s143_s20, %s143_s20 }
  0x19   : > { %p488_p13 = scmp.ne.s32.totalorder %s143_s20, %s487_s4  ;;  %p496_p5 = scmp.lt.s32.totalorder %s487_s4, %s487_s4 }
  0x1b   : > { %p490_p0 = pnand %p488_p13, %p476_p8  ;;  %p497_p4 = por %p496_p5, %p495_p2 }
  0x1d   : > { %p491_p1 = pneg %p490_p0 }
  0x1f   : > { %p498_p3 = pnand %p497_p4, %p491_p1 }
  0x21   : > { %501 = shalt.err (!%p498_p3)
}
  0x22   : > { %425 = dma.hbm_to_vmem [thread:$0]  (!%p656_p6), %s763_s0, 32, %s143_s20, [#allocation4]  }
  0x23   : > { %s502_s9 = scalar_lea.hbm %s764_s1, 512 }
  0x24   : > { %p503_p7 = scmp.ne.s32.totalorder %s764_s1, %s502_s9  ;;  %p509_p3 = scmp.lt.u32.totalorder %s502_s9, %s764_s1 }
  0x26   : > { %p505_p9 = pnand %p503_p7, %p476_p8 }
  0x28   : > { %p506_p4 = pneg %p505_p9 }
  0x2a   : > { %p511_p10 = pnand %p509_p3, %p506_p4 }
  0x2c   : > { %514 = shalt.err (!%p511_p10)
}
  0x2d   : > { %s515_s20 = scalar_lea.vmem %s660_s22, 512  ;;  %p523_p0 = scmp.lt.s32.totalorder %s660_s22, %s660_s22 }
  0x2e   : > { %p516_p11 = scmp.ne.s32.totalorder %s660_s22, %s515_s20  ;;  %p524_p1 = scmp.lt.s32.totalorder %s515_s20, %s515_s20 }
  0x30   : > { %p518_p12 = pnand %p516_p11, %p476_p8  ;;  %p525_p2 = por %p524_p1, %p523_p0 }
  0x32   : > { %p519_p13 = pneg %p518_p12 }
  0x34   : > { %p526_p5 = pnand %p525_p2, %p519_p13 }
  0x36   : > { %529 = shalt.err (!%p526_p5)
}
  0x37   : > { %s594_s24 = smov 64   ;;  %s595_s25 = smov 4  }
  0x38   : > { %428 = dma.hbm_to_vmem [thread:$0]  (!%p656_p6), %s764_s1, 512, %s660_s22, [#allocation7], %s594_s24, %s594_s24, %s595_s25  }
  0x39   : > { %p773_p7 = scmp.ne.s32.totalorder %s770_s17, 0 }
  0x3a   : > { %p774_p8 = scmp.ne.s32.totalorder (!%p773_p7), %s771_s18, 0 }
  0x3b   : > { %171 = sbr.rel (%p773_p7) target bundleno = 802 (0x322), region = 32 }
  0x42   : > { %569 = dma.done.wait (%p774_p8), [#allocation4], 32  }
  0x43   : > { %571 = vsyncadd (%p774_p8), [#allocation4], 4294967264 }
  0x44   : > { %573 = dma.done.wait (%p774_p8), [#allocation7], 512  }
  0x45   : > { %575 = vsyncadd (%p774_p8), [#allocation7], 4294966784  ;;  %p385_p9 = scmp.ne.s32.totalorder %s582_s12, 0 }
  0x46   : > { %v194_v0 = vld [vmem:[#allocation3] sm:$0x3] (!%p385_p9)  ;;  %vm195_vm0 = vcmask (!%p385_p9), 254976  }
  0x47   : > { %193 = sbr.rel (%p385_p9) target bundleno = 78 (0x4e), region = 44  ;;  %196 = vst.msk [vmem:[#allocation2] sm:$0x3] (!%p385_p9), %vm195_vm0, %v194_v0 }
  0x4e PF: > { %s398_s17 = sshll.u32 %s582_s12, 4  ;;  %v596_v1 = vmov 0.0   ;;  %vm597_vm1 = vmmov 0   ;;  %v197_v4 = vld [vmem:[#allocation2] sm:$0x3]  ;;  %vm226_vm2 = vcmask 261120   ;;  %s206_s28 = scalar_lea.vmem %s765_s2, %s582_s12 }
  0x4f   : > { %402 = vmatprep.subr.bf16.mxu0 %v596_v1  ;;  %406 = vmatprep.mubr.msk.bf16.mxu0 %vm597_vm1, %v596_v1  ;;  %s201_s22 = scalar_lea.vmem [#allocation6], %s398_s17  ;;  %v198_v5 = vpack.c.bf16 %v197_v4, %v197_v4  ;;  %v388_v6 = vld [vmem:[%s206_s28] ss:$0 sm:$0xff]  ;;  %s598_s29 = smov 96   ;;  %vm296_vm3 = vcmask 254976  }
  0x50   : > { %v468_v2 = vld [vmem:[%s201_s22] sm:$0xff]   ;;  %v469_v3 = vld [vmem:[%s201_s22 + $0x8] sm:$0xff]   ;;  %s599_s30 = smov 64   ;;  %p393_p6 = scmp.ne.s32.totalorder %s582_s12, 1 }
  0x51   : > { %403 = vmatpush3.bf16.msra.mxu0 %v468_v2 }
  0x52   : > { %404 = vmatprep.subr.bf16.mxu0 %v596_v1 }
  0x55   : > { %405 = vmatpush3.bf16.msra.mxu0 %v469_v3 }
  0x58   : > { %407 = vmatmul.mubr.msk.bf16.vlgmr.msra.gmra.mrb[0].mxu0 %vm226_vm2, %v198_v5 }
 0x12b   : > { %v264_v7 = vpop.f32.mrb[0].mxu0 }
 0x12c   : > { %v265_v8 = vadd.f32 %v388_v6, %v264_v7  ;;  %v408_v9 = vpop.f32.mrb[1].mxu0 }
 0x12d   : > { %v267_v10 = vpop.f32.mrb[2].mxu0 }
 0x12e   : > { %278 = vrot.lane.b32.xlu0 %v265_v8, %s598_s29  ;;  %v409_v11 = vpop.f32.mrb[3].mxu0  ;;  %v276_v12 = vmax.f32 %v265_v8, 0.0  ;;  %v392_v15 = vmul.f32 -1.442695, %v265_v8 }
 0x130   : > { %470 = vpow2.f32 %v392_v15 }
 0x13a   : > { %v471_v16 = vpop.eup %470 }
 0x13b   : > { %v273_v17 = vadd.f32 1.0, %v471_v16 }
 0x13d   : > { %472 = vrcp.f32 %v273_v17 }
 0x147   : > { %v473_v18 = vpop.eup %472 }
 0x1a0   : > { %v279_v13 = vpop.permute.xlu0 %278 }
 0x1a1   : > { %v281_v14 = vsub.f32 %v276_v12, %v279_v13 }
 0x1a3   : > { %283 = vrot.lane.b32.xlu0 %v281_v14, %s598_s29 }
 0x215   : > { %v284_v19 = vpop.permute.xlu0 %283 }
 0x216   : > { %v286_v20 = vmul.f32 %v473_v18, %v284_v19 }
 0x218   : > { %288 = vrot.lane.b32.xlu1 %v286_v20, %s599_s30 }
 0x28a   : > { %v289_v21 = vpop.permute.xlu1 %288 }
 0x28b   : > { %v291_v22 = vadd.f32 %v289_v21, %v265_v8 }
 0x28d   : > { %293 = vrot.lane.b32.xlu1 %v291_v22, %s599_s30 }
 0x2fa   : > { %301 = sbr.rel (%p393_p6) target bundleno = 777 (0x309), region = 48 }
 0x2ff   : > { %v294_v23 = vpop.permute.xlu1 %293 }
 0x300   : > { %297 = vst.msk [vmem:[#allocation2] sm:$0x3] %vm296_vm3, %v294_v23 }
 0x307   : > { %v302_v24 = vld [vmem:[#allocation2] sm:$0x3] }
 0x308   : > { %303 = vst.msk [vmem:[#allocation8] sm:$0x3] %vm296_vm3, %v302_v24 }
 0x309 PF: > { %p728_p4 = scmp.eq.s32.totalorder %s378_s15, 1  ;;  %s600_s5 = smov [#allocation8]  }
 0x30a   : > { %s313_s6 = sshll.u32 %s600_s5, 4  ;;  %s314_s6 = int_to_ptr.vmem [resolvable:$true] %s313_s6 }
 0x30b   : > { %s530_s7 = scalar_lea.vmem %s314_s6, 32  ;;  %p537_p12 = scmp.lt.s32.totalorder %s314_s6, %s314_s6 }
 0x30c   : > { %p531_p3 = scmp.ne.s32.totalorder %s314_s6, %s530_s7  ;;  %p538_p13 = scmp.lt.s32.totalorder %s530_s7, %s530_s7 }
 0x30e   : > { %p532_p10 = pnand %p531_p3, %p728_p4  ;;  %p539_p0 = por %p538_p13, %p537_p12 }
 0x310   : > { %p533_p11 = pneg %p532_p10 }
 0x312   : > { %p540_p1 = pnand %p539_p0, %p533_p11 }
 0x314   : > { %543 = shalt.err (!%p540_p1)
}
 0x315   : > { %s544_s15 = scalar_lea.hbm %s766_s3, 32 }
 0x316   : > { %p545_p2 = scmp.ne.s32.totalorder %s766_s3, %s544_s15  ;;  %p550_p8 = scmp.lt.u32.totalorder %s544_s15, %s766_s3 }
 0x318   : > { %p546_p5 = pnand %p545_p2, %p728_p4 }
 0x31a   : > { %p547_p7 = pneg %p546_p5 }
 0x31c   : > { %p552_p9 = pnand %p550_p8, %p547_p7 }
 0x31e   : > { %555 = shalt.err (!%p552_p9)
}
 0x31f   : > { %419 = dma.vmem_to_hbm [thread:$0]  (%p728_p4), %s314_s6, 32, %s766_s3, [#allocation5]  }
 0x320   : > { %577 = dma.done.wait (%p728_p4), [#allocation5], 32  }
 0x321   : > { %579 = vsyncadd (%p728_p4), [#allocation5], 4294967264 }
 0x322 PF: > { %s16_s14 = sadd.s32 1, %s590_s14   ;;  %s776_s12 = smov %s586_s13 }
 0x323   : > { %p13_p6 = scmp.ge.s32.totalorder %s16_s14, 4   ;;  %s777_s13 = smov %s779_s16 }
 0x325   :  { %15 = sbr.rel (!%p13_p6) target bundleno = 4 (0x4), region = 77 }
 0x32c   :  { %326 = vsyncpa [#allocation4], 1 }
 0x32d   :  { %328 = vsyncpa [#allocation4 + $0x1], 1 }
 0x32e   :  { %329 = vsyncpa [#allocation7], 1 }
 0x32f   :  { %330 = vsyncpa [#allocation5], 1 }
 0x330   :  { %332 = vsyncpa [#allocation5 + $0x1], 1 }

</bundles_post_ra>
